<compile_context>
chip_gen: v6e
topology: v6e:2x2x1
jax: 0.10.0
libtpu: 0.0.40
codegen_flags: <defaults>
</compile_context>

<pallas_src>
import functools

import jax
import jax.numpy as jnp
from jax.experimental import pallas as pl
from jax.experimental.pallas import tpu as pltpu

_LANE = 128
_SUBLANE = 8


def _vmem_capacity_bytes():
    try:
        return int(pltpu.get_tpu_info().vmem_capacity_bytes)
    except Exception:
        return 64 * 1024 * 1024  # assume the strictest generation (v7x: 64 MiB / TC)


def _primitive_loss_kernel(pt, p_total, need_row_mask,
                           refined_ref, ops_ref, out_ref):
    """Grid = (m_tiles, primitive_chunks); the chunk axis (inner) is the reduction axis.

    refined_ref: (1, Mt)   -- constant along the inner (chunk) grid axis
    ops_ref:     (Pt, Mt)  -- Pt primitives (sublane-dense), Mt lanes
    out_ref:     (1, Mt)   -- f32 per-column partial sums, resident across the chunk axis
    """
    c = pl.program_id(1)

    @pl.when(c == 0)
    def _init():
        out_ref[...] = jnp.zeros_like(out_ref)

    # Hot path: cast-to-f32, diff, square (VPU).  No masking here.
    r = refined_ref[...].astype(jnp.float32)          # (1, Mt)
    o = ops_ref[...].astype(jnp.float32)              # (Pt, Mt)
    d = r - o                                         # sublane-broadcast subtract
    sq = d * d

    if need_row_mask:
        # Only the last primitive chunk carries padded (unspecified) rows; keep the
        # iota/compare/select off the hot path by gating it behind pl.when.
        is_last = c == pl.num_programs(1) - 1

        @pl.when(jnp.logical_not(is_last))
        def _acc():
            out_ref[...] += jnp.sum(sq, axis=0, keepdims=True)

        @pl.when(is_last)
        def _acc_masked():
            rows = c * pt + jax.lax.broadcasted_iota(jnp.int32, sq.shape, 0)
            # select (not multiply): padded rows are unspecified garbage (may be NaN/Inf).
            masked = jnp.where(rows < p_total, sq, 0.0)
            out_ref[...] += jnp.sum(masked, axis=0, keepdims=True)
    else:
        out_ref[...] += jnp.sum(sq, axis=0, keepdims=True)
    # TODO(synk): optional v7x micro-opt: offload the axis-0 reduce to the idle MXU via
    # jnp.dot(ones((1, Pt)), sq) -- only after verifying the f32 MXU precision path.


def primitive_loss(refined_distances, primitive_distances, operation_samples,
                   *, target_chunk_bytes=6 * 1024 * 1024, max_mt=32 * 1024):
    """loss = sum_p mean((refined - operation_samples[p])**2)."""
    # TODO(synk): the reference forward never returns and only uses primitive_distances
    # for its length; we mirror that (leading dim = loop count).
    P = primitive_distances.shape[0]
    if P == 0:
        return jnp.float32(0.0)
    assert operation_samples.shape[0] >= P
    ops = operation_samples[:P]
    B, N = refined_distances.shape
    assert ops.shape[1:] == (B, N)

    M = B * N
    itemsize = jnp.dtype(ops.dtype).itemsize
    itemsize_r = jnp.dtype(refined_distances.dtype).itemsize

    # ---- lane-dense flattening (NO wrapper-side padding: reshape only) ------
    refined_flat = refined_distances.reshape(1, M)
    ops_flat = ops.reshape(P, M)

    # Lane tile: full extent if it fits (any size is allowed when it equals the
    # array dim), else a multiple of 128 with a ragged edge handled by Pallas'
    # masked edge-block DMAs.
    Mt = M if M <= max_mt else max_mt
    num_mc = pl.cdiv(M, Mt)

    # Sublane (primitive-row) granularity is dtype-aware: packed dtypes need taller
    # tiles (8 rows f32, 16 rows bf16, 32 rows int8/fp8) for fully-populated vregs.
    gran = max(_SUBLANE, 32 // itemsize)

    # Primitives per chunk: fill ~target_chunk_bytes of ops per grid step.
    rows_fit = max(int(target_chunk_bytes // (Mt * itemsize)), 1)
    Pt = max(gran, (rows_fit // gran) * gran)

    # ---- generation-aware VMEM budget ---------------------------------------
    # Count the double-buffered ops chunk, the refined and out tiles (1-row tiles are
    # sublane-padded to 8 rows in VMEM), plus headroom for f32 intermediates of the
    # (Pt, Mt) expression that Mosaic may materialize.
    budget = int(_vmem_capacity_bytes() * 0.80)
    fixed = 2 * _SUBLANE * Mt * itemsize_r + 2 * _SUBLANE * Mt * 4
    per_row = Mt * (2 * itemsize + 2 * 4)
    pt_budget = int((budget / 1.3 - fixed) // per_row)
    pt_budget = max(gran, (pt_budget // gran) * gran)
    Pt = min(Pt, pt_budget)

    if Pt >= P:
        Pt = P  # one chunk covers every primitive; no ragged rows, no mask needed
    num_pc = pl.cdiv(P, Pt)
    need_row_mask = (P % Pt) != 0

    vmem_need = fixed + Pt * per_row
    vmem_limit = int(min(max(int(1.3 * vmem_need), 16 * 1024 * 1024), budget))

    kernel = functools.partial(_primitive_loss_kernel, Pt, P, need_row_mask)

    # One lane-dense f32 partial-sum row per column, accumulated across the
    # primitive-chunk axis (output block stays resident across the inner grid axis
    # and is written back once per m-tile).
    partial = pl.pallas_call(
        kernel,
        out_shape=jax.ShapeDtypeStruct((1, M), jnp.float32),
        grid_spec=pltpu.PrefetchScalarGridSpec(
            num_scalar_prefetch=0,
            # m-tile outer ("parallel", megacore-shardable on v7x), primitive-chunk
            # inner ("arbitrary", reduction axis last -> output resident, refined
            # tile not re-DMA'd per chunk).
            grid=(num_mc, num_pc),
            in_specs=[
                pl.BlockSpec((1, Mt), lambda m, c: (0, m)),    # refined
                pl.BlockSpec((Pt, Mt), lambda m, c: (c, m)),   # ops chunk
            ],
            out_specs=pl.BlockSpec((1, Mt), lambda m, c: (0, m)),
        ),
        compiler_params=pltpu.CompilerParams(
            dimension_semantics=("parallel", "arbitrary"),
            vmem_limit_bytes=vmem_limit,
        ),
    )(refined_flat, ops_flat)

    # Tiny final reduce + normalization outside the kernel.
    return jnp.sum(partial) / jnp.float32(B * N)


def _reference(refined, primitive_distances, operation_samples):
    # pure-JAX reference: sum_p MSE(refined, operation_samples[p])
    loss = jnp.float32(0.0)
    for p in range(primitive_distances.shape[0]):
        loss = loss + jnp.mean((refined.astype(jnp.float32)
                                - operation_samples[p].astype(jnp.float32)) ** 2)
    return loss


if __name__ == "__main__":
    key = jax.random.PRNGKey(0)

    # ---- primary config (shapes implied by the module forward) --------------
    k1, k2, k3 = jax.random.split(key, 3)
    B, N, P = 2, 128, 4
    refined_distances = jax.random.normal(k1, (B, N), dtype=jnp.float32)
    primitive_distances = jax.random.normal(k2, (P, B, N), dtype=jnp.float32)
    operation_samples = jax.random.normal(k3, (P, B, N), dtype=jnp.float32)

    loss = primitive_loss(refined_distances, primitive_distances, operation_samples)
    loss = jax.block_until_ready(loss)
    ref = _reference(refined_distances, primitive_distances, operation_samples)
    assert jnp.allclose(loss, ref, rtol=1e-5, atol=1e-5), (loss, ref)

    # ---- ragged / multi-chunk config: exercises edge-block masking paths ----
    k4, k5, k6 = jax.random.split(jax.random.PRNGKey(0), 3)
    B2, N2, P2 = 3, 100, 11          # M = 300 (not a multiple of 128), P ragged
    refined2 = jax.random.normal(k4, (B2, N2), dtype=jnp.float32)
    prim2 = jax.random.normal(k5, (P2, B2, N2), dtype=jnp.float32)
    ops2 = jax.random.normal(k6, (P2, B2, N2), dtype=jnp.float32)

    loss2 = primitive_loss(refined2, prim2, ops2,
                           target_chunk_bytes=4096, max_mt=128)
    loss2 = jax.block_until_ready(loss2)
    ref2 = _reference(refined2, prim2, ops2)
    assert jnp.allclose(loss2, ref2, rtol=1e-5, atol=1e-5), (loss2, ref2)

    print("KERNEL_OK")
</pallas_src>

<mosaic_0001>
module attributes {stable_mosaic.version = 11 : i64} {
  func.func @_primitive_loss_kernel(%arg0: i32, %arg1: i32, %arg2: memref<1x256xf32, #tpu.memory_space<vmem>>, %arg3: memref<4x256xf32, #tpu.memory_space<vmem>>, %arg4: memref<1x256xf32, #tpu.memory_space<vmem>>) attributes {dimension_semantics = [#tpu.dimension_semantics<parallel>, #tpu.dimension_semantics<arbitrary>], iteration_bounds = array<i64: 1, 1>, scalar_prefetch = 0 : i64, scratch_operands = 0 : i64, tpu.core_type = #tpu.core_type<tc>, window_params = [{transform_indices = @transform_0, window_bounds = array<i64: 1, 256>}, {transform_indices = @transform_1, window_bounds = array<i64: 4, 256>}, {transform_indices = @transform_2, window_bounds = array<i64: 1, 256>}]} {
    %c0_i32 = arith.constant 0 : i32
    %0 = arith.cmpi eq, %arg1, %c0_i32 : i32
    %1 = arith.extui %0 : i1 to i32
    %c0_i32_0 = arith.constant 0 : i32
    %2 = arith.cmpi ne, %1, %c0_i32_0 : i32
    scf.if %2 {
      %cst_8 = arith.constant 0.000000e+00 : f32
      %13 = vector.broadcast %cst_8 : f32 to vector<1x256xf32>
      %c0_9 = arith.constant 0 : index
      %c0_10 = arith.constant 0 : index
      %14 = vector.load %arg4[%c0_9, %c0_10] : memref<1x256xf32, #tpu.memory_space<vmem>>, vector<1x256xf32>
      tpu.vector_store %arg4[%c0_9, %c0_10], %13 {strides = array<i32>} : memref<1x256xf32, #tpu.memory_space<vmem>>, vector<1x256xf32>,
    } else {
    }
    %c0 = arith.constant 0 : index
    %c0_1 = arith.constant 0 : index
    %3 = vector.load %arg2[%c0, %c0_1] : memref<1x256xf32, #tpu.memory_space<vmem>>, vector<1x256xf32>
    %c0_2 = arith.constant 0 : index
    %c0_3 = arith.constant 0 : index
    %4 = vector.load %arg3[%c0_2, %c0_3] : memref<4x256xf32, #tpu.memory_space<vmem>>, vector<4x256xf32>
    %5 = vector.broadcast %3 : vector<1x256xf32> to vector<4x256xf32>
    %6 = arith.subf %5, %4 : vector<4x256xf32>
    %7 = arith.mulf %6, %6 : vector<4x256xf32>
    %c0_4 = arith.constant 0 : index
    %c0_5 = arith.constant 0 : index
    %8 = vector.load %arg4[%c0_4, %c0_5] : memref<1x256xf32, #tpu.memory_space<vmem>>, vector<1x256xf32>
    %cst = arith.constant dense<0.000000e+00> : vector<256xf32>
    %9 = vector.multi_reduction <add>, %7, %cst [0] : vector<4x256xf32> to vector<256xf32>
    %10 = vector.shape_cast %9 : vector<256xf32> to vector<1x256xf32>
    %11 = arith.addf %8, %10 : vector<1x256xf32>
    %c0_6 = arith.constant 0 : index
    %c0_7 = arith.constant 0 : index
    %12 = vector.load %arg4[%c0_6, %c0_7] : memref<1x256xf32, #tpu.memory_space<vmem>>, vector<1x256xf32>
    tpu.vector_store %arg4[%c0_6, %c0_7], %11 {strides = array<i32>} : memref<1x256xf32, #tpu.memory_space<vmem>>, vector<1x256xf32>,
    return
  }
  func.func @transform_0(%arg0: i32, %arg1: i32) -> (i32, i32) {
    %c0_i32 = arith.constant 0 : i32
    %c0_i32_0 = arith.constant 0 : i32
    return %c0_i32, %arg0 : i32, i32
  }
  func.func @transform_1(%arg0: i32, %arg1: i32) -> (i32, i32) {
    %c0_i32 = arith.constant 0 : i32
    return %arg1, %arg0 : i32, i32
  }
  func.func @transform_2(%arg0: i32, %arg1: i32) -> (i32, i32) {
    %c0_i32 = arith.constant 0 : i32
    %c0_i32_0 = arith.constant 0 : i32
    return %c0_i32, %arg0 : i32, i32
  }
}

</mosaic_0001>

<bundles_post_ra>
// kernel: tpu_custom_call.1
= control target key start
LH: loop header
LB: loop body
LE: loop exit
PB: predicated region body
PF: predicated region fallthrough
CT: control target
= control target key end

     0   :  { %7 = vsyncpa [#allocation3], 0  ;;  %s230_s0 = inlined_call_operand.hbm [shape: f32[1,256], index: 0, kind: input, shape index: {}]   ;;  %s231_s1 = inlined_call_operand.hbm [shape: f32[4,256], index: 1, kind: input, shape index: {}]   ;;  %s232_s2 = inlined_call_operand.hbm [shape: f32[1,256], index: 2, kind: output, shape index: {}]  }
   0x1   :  { %8 = vsyncpa [#allocation6], 0 }
   0x2   :  { %9 = vsyncpa [#allocation4], 0  ;;  %s193_s9 = smov [#allocation2]   ;;  %s194_s11 = smov [#allocation5]  }
   0x3   :  { %s16_s10 = sshll.u32 %s193_s9, 4  ;;  %s26_s12 = sshll.u32 %s194_s11, 4  ;;  %s17_s10 = int_to_ptr.vmem [resolvable:$true] %s16_s10  ;;  %s27_s12 = int_to_ptr.vmem [resolvable:$true] %s26_s12 }
   0x4   :  { %s135_s13 = scalar_lea.vmem %s17_s10, 32  ;;  %p140_p1 = scmp.lt.s32.totalorder %s17_s10, %s17_s10 }
   0x5   :  { %p136_p0 = scmp.ne.s32.totalorder %s17_s10, %s135_s13  ;;  %p141_p2 = scmp.lt.s32.totalorder %s135_s13, %s135_s13 }
   0x7   :  { %p142_p3 = por %p141_p2, %p140_p1 }
   0x9   :  { %p143_p4 = pnand %p142_p3, %p136_p0 }
   0xb   :  { %146 = shalt.err (!%p143_p4)
}
   0xc   :  { %19 = dma.hbm_to_vmem [thread:$0]  %s230_s0, 32, %s17_s10, [#allocation3]  }
   0xd   :  { %s155_s16 = scalar_lea.vmem %s27_s12, 128  ;;  %p160_p6 = scmp.lt.s32.totalorder %s27_s12, %s27_s12 }
   0xe   :  { %p156_p5 = scmp.ne.s32.totalorder %s27_s12, %s155_s16  ;;  %p161_p7 = scmp.lt.s32.totalorder %s155_s16, %s155_s16 }
  0x10   :  { %p162_p8 = por %p161_p7, %p160_p6 }
  0x12   :  { %p163_p9 = pnand %p162_p8, %p156_p5 }
  0x14   :  { %166 = shalt.err (!%p163_p9)
}
  0x15   :  { %29 = dma.hbm_to_vmem [thread:$0]  %s231_s1, 128, %s27_s12, [#allocation6]  }
  0x16   :  { %187 = dma.done.wait [#allocation3], 32  }
  0x17   :  { %188 = vsyncadd [#allocation3], 4294967264 }
  0x18   :  { %189 = dma.done.wait [#allocation6], 128  }
  0x19   :  { %190 = vsyncadd [#allocation6], 4294967168  ;;  %v40_v0 = vlaneseq  ;;  %v195_v3 = vmov 0.0   ;;  %v45_v6 = vld [vmem:[#allocation2] sm:$0x3]  ;;  %v46_v7 = vld [vmem:[#allocation5] sm:$0xff] }
  0x1a   :  { %v59_v10 = vcombine.high %v46_v7, %v46_v7  ;;  %vm66_vm1 = vcmask 1043456   ;;  %v196_v21 = vmov 1966171168   ;;  %s197_s0 = smov [#allocation7]  }
  0x1b   :  { %vm219_vm0 = vcmp.lt.s32.totalorder %v40_v0, 256  ;;  %v49_v2 = vshrl.u32 %v40_v0, 7  ;;  %v85_v22 = vunpack.c.l.s4 %v196_v21  ;;  %s111_s1 = sshll.u32 %s197_s0, 4  ;;  %s112_s1 = int_to_ptr.vmem [resolvable:$true] %s111_s1 }
  0x1c   :  { %44 = vst.msk [vmem:[#allocation7] sm:$0x3] %vm219_vm0, %v195_v3  ;;  %s167_s19 = scalar_lea.vmem %s112_s1, 32  ;;  %p172_p11 = scmp.lt.s32.totalorder %s112_s1, %s112_s1 }
  0x1d   :  { %v50_v4 = vsub.s32 0, %v49_v2  ;;  %v54_v5 = vsub.s32 1, %v49_v2  ;;  %v86_v25 = vunpack.c.0.s8 %v85_v22  ;;  %p168_p10 = scmp.ne.s32.totalorder %s112_s1, %s167_s19  ;;  %p173_p12 = scmp.lt.s32.totalorder %s167_s19, %s167_s19 }
  0x1f   :  { %v51_v8 = vrot.slane %v45_v6, %v50_v4  ;;  %v55_v9 = vrot.slane %v45_v6, %v54_v5  ;;  %v89_v30 = vsub.s32 %v86_v25, %v49_v2  ;;  %p174_p13 = por %p173_p12, %p172_p11 }
  0x21   :  { %v61_v11 = vsub.f32 %v51_v8, %v46_v7  ;;  %v62_v12 = vsub.f32 %v55_v9, %v59_v10  ;;  %p175_p0 = pnand %p174_p13, %p168_p10 }
  0x23   :  { %v63_v13 = vmul.f32 %v61_v11, %v61_v11  ;;  %v64_v14 = vmul.f32 %v62_v12, %v62_v12  ;;  %v65_v35 = vld [vmem:[#allocation7] sm:$0x3] }
  0x25   :  { %v67_v15 = vsel %vm66_vm1, %v63_v13, 0.0  ;;  %v74_v16 = vsel %vm66_vm1, %v64_v14, 0.0 }
  0x26   :  { %v68_v17 = vrot.slane %v67_v15, 4  ;;  %v75_v18 = vrot.slane %v74_v16, 4 }
  0x28   :  { %v69_v19 = vadd.f32 %v68_v17, %v67_v15  ;;  %v76_v20 = vadd.f32 %v75_v18, %v74_v16 }
  0x2a   :  { %v70_v23 = vrot.slane %v69_v19, 2  ;;  %v77_v24 = vrot.slane %v76_v20, 2 }
  0x2c   :  { %v71_v26 = vadd.f32 %v70_v23, %v69_v19  ;;  %v78_v27 = vadd.f32 %v77_v24, %v76_v20 }
  0x2e   :  { %v72_v28 = vrot.slane %v71_v26, 1  ;;  %v79_v29 = vrot.slane %v78_v27, 1 }
  0x30   :  { %v73_v31 = vadd.f32 %v72_v28, %v71_v26  ;;  %v80_v32 = vadd.f32 %v79_v29, %v78_v27 }
  0x32   :  { %v83_v33 = vcombine.low %v73_v31, %v80_v32 }
  0x34   :  { %v90_v34 = vrot.slane %v83_v33, %v89_v30 }
  0x36   :  { %v97_v36 = vrot.slane %v90_v34, %v89_v30 }
  0x38   :  { %v99_v37 = vadd.f32 %v97_v36, %v65_v35 }
  0x3a   :  { %104 = vst.msk [vmem:[#allocation7] sm:$0x3] %vm219_vm0, %v99_v37 }
  0x3b   :  { %178 = shalt.err (!%p175_p0)
}
  0x3c   :  { %114 = dma.vmem_to_hbm [thread:$0]  %s112_s1, 32, %s232_s2, [#allocation4]  }
  0x3d   :  { %191 = dma.done.wait [#allocation4], 32  }
  0x3e   :  { %192 = vsyncadd [#allocation4], 4294967264 }
  0x3f   :  { %118 = vsyncpa [#allocation3], 1 }
  0x40   :  { %119 = vsyncpa [#allocation6], 1 }
  0x41   :  { %120 = vsyncpa [#allocation4], 1 }

</bundles_post_ra>
